<compile_context>
chip_gen: v6e
topology: v6e:2x2x1
jax: 0.10.0
libtpu: 0.0.40
codegen_flags: <defaults>
</compile_context>

<pallas_src>
import jax
import jax.numpy as jnp
from jax import lax
from jax.experimental import pallas as pl
from jax.experimental.pallas import tpu as pltpu


_CHUNK = 8  # sublanes per inner-loop step; (8, 512) f32 chunks keep <~50 vregs live


def _round_up(x, m):
    return ((x + m - 1) // m) * m


def _volume_elasticity_kernel(la_ref, f_ref, v_ref):
    """la_ref: (1,) f32 SMEM.  f_ref: (9, SUB, LANE) f32.  v_ref: (SUB, LANE) f32."""
    la = la_ref[0]
    n_chunks = f_ref.shape[1] // _CHUNK

    def body(c, carry):
        r = pl.multiple_of(c * _CHUNK, _CHUNK)
        rows = pl.ds(r, _CHUNK)
        # rows of F (row-major flattening of each 3x3 matrix), dense (8, LANE) tiles
        a = f_ref[0, rows, :]; b = f_ref[1, rows, :]; c0 = f_ref[2, rows, :]  # F00 F01 F02
        d = f_ref[3, rows, :]; e = f_ref[4, rows, :]; f0 = f_ref[5, rows, :]  # F10 F11 F12
        g = f_ref[6, rows, :]; h = f_ref[7, rows, :]; i0 = f_ref[8, rows, :]  # F20 F21 F22

        # determinant of each 3x3 matrix (cofactor expansion), shape (8, LANE)
        det = (a * (e * i0 - f0 * h)
               - b * (d * i0 - f0 * g)
               + c0 * (d * h - e * g))

        # la * J * (J - 1); padded entries have det = 0 -> val = 0 (sliced off later)
        v_ref[rows, :] = la * det * (det - 1.0)
        return carry

    lax.fori_loop(0, n_chunks, body, 0, unroll=False)


def volume_elasticity(F, log_E, nu, *, lane=512, max_sub=256):
    """F: (N, 3, 3) float32 -> stress (N, 3, 3) float32."""
    N = F.shape[0]
    dtype = F.dtype

    # parameter glue (matches the PyTorch module's __init__/forward)
    E = jnp.exp(jnp.asarray(log_E, dtype))
    nu_ = jnp.asarray(nu, dtype)
    la = (E * nu_ / ((1.0 + nu_) * (1.0 - 2.0 * nu_))).reshape(1)  # (1,) scalar

    # --- tiling: batch laid out as (rows, lane); block = (9, sub, lane) -----
    lane = max(128, (int(lane) // 128) * 128)          # lane multiple of 128
    rows = pl.cdiv(N, lane)
    sub = min(int(max_sub), _round_up(rows, 8))
    sub = max(8, (sub // 8) * 8)                        # sublane multiple of 8
    # ensure >= 2 grid steps when there's enough work (v7x: 2 TensorCores)
    if rows > 8 and _round_up(rows, sub) // sub < 2:
        sub = max(8, _round_up(sub // 2, 8))
    rows_pad = _round_up(rows, sub)
    n_pad = rows_pad * lane
    grid = rows_pad // sub

    # layout glue: (N,3,3) -> (9, rows_pad, lane) SoA slab. Pad + transpose is
    # one XLA copy; the trailing reshape only splits the contiguous last dim.
    f_soa = jnp.pad(F.reshape(N, 9), ((0, n_pad - N), (0, 0))).T
    f_soa = f_soa.reshape(9, rows_pad, lane)

    val = pl.pallas_call(
        _volume_elasticity_kernel,
        out_shape=jax.ShapeDtypeStruct((rows_pad, lane), dtype),
        grid=(grid,),
        in_specs=[
            pl.BlockSpec(memory_space=pltpu.MemorySpace.SMEM),      # la scalar
            pl.BlockSpec((9, sub, lane), lambda i: (0, i, 0)),      # F SoA tile
        ],
        out_specs=pl.BlockSpec((sub, lane), lambda i: (i, 0)),      # val tile
        compiler_params=pltpu.CompilerParams(
            dimension_semantics=("parallel",),
            vmem_limit_bytes=32 * 1024 * 1024),
    )(la, f_soa)

    # stress = val * I built from the (N,) values; the dense (N,3,3) diagonal
    # tensor is required by the module contract.
    val = val.reshape(-1)[:N]
    eye = jnp.eye(3, dtype=dtype)
    return val[:, None, None] * eye[None, :, :]


def _reference(F, log_E, nu):
    """Pure-JAX reference matching the PyTorch forward."""
    E = jnp.exp(jnp.asarray(log_E, F.dtype))
    nu_ = jnp.asarray(nu, F.dtype)
    la = E * nu_ / ((1.0 + nu_) * (1.0 - 2.0 * nu_))
    J = jnp.linalg.det(F).reshape(-1, 1, 1)
    I = jnp.eye(3, dtype=F.dtype)[None]
    return la * J * (J - 1.0) * I


if __name__ == "__main__":
    # deterministic parameters (module __init__): log_E = log(1e5), nu = 0.3
    log_E = float(jnp.log(jnp.float32(100000.0)))
    nu = 0.3

    key = jax.random.PRNGKey(0)

    # --- small deterministic case: batch of 16 deformation gradients --------
    N1 = 16
    F1 = (jnp.eye(3, dtype=jnp.float32)[None]
          + 0.1 * jax.random.normal(key, (N1, 3, 3), dtype=jnp.float32))
    stress1 = jax.block_until_ready(volume_elasticity(F1, log_E, nu))
    ref1 = _reference(F1, log_E, nu)
    assert stress1.shape == (N1, 3, 3)
    # off-diagonals exact zero on both sides
    off = stress1 - jnp.eye(3, dtype=stress1.dtype)[None] * stress1
    assert jnp.max(jnp.abs(off)) == 0.0
    # scale-aware tolerance: la ~ 5.8e4 amplifies f32 det round-off
    assert jnp.allclose(stress1, ref1, rtol=1e-3, atol=1.0), (
        float(jnp.max(jnp.abs(stress1 - ref1))))

    # --- second case exercising multi-step grid + multi-chunk inner loop ----
    key2 = jax.random.PRNGKey(0)
    N2 = 5000
    F2 = (jnp.eye(3, dtype=jnp.float32)[None]
          + 0.1 * jax.random.normal(key2, (N2, 3, 3), dtype=jnp.float32))
    stress2 = jax.block_until_ready(
        volume_elasticity(F2, log_E, nu, lane=128, max_sub=16))
    ref2 = _reference(F2, log_E, nu)
    assert stress2.shape == (N2, 3, 3)
    assert jnp.allclose(stress2, ref2, rtol=1e-3, atol=1.0), (
        float(jnp.max(jnp.abs(stress2 - ref2))))

    print("KERNEL_OK")
</pallas_src>

<mosaic_0001>
module attributes {stable_mosaic.version = 11 : i64} {
  func.func @_volume_elasticity_kernel(%arg0: i32, %arg1: memref<1xf32, #tpu.memory_space<smem>>, %arg2: memref<9x8x512xf32, #tpu.memory_space<vmem>>, %arg3: memref<8x512xf32, #tpu.memory_space<vmem>>) attributes {dimension_semantics = [#tpu.dimension_semantics<parallel>], iteration_bounds = array<i64: 1>, scalar_prefetch = 0 : i64, scratch_operands = 0 : i64, tpu.core_type = #tpu.core_type<tc>, window_params = [{transform_indices = @transform_0, window_bounds = array<i64: 1>}, {transform_indices = @transform_1, window_bounds = array<i64: 9, 8, 512>}, {transform_indices = @transform_2, window_bounds = array<i64: 8, 512>}]} {
    %c0 = arith.constant 0 : index
    %0 = memref.load %arg1[%c0] : memref<1xf32, #tpu.memory_space<smem>>
    %c0_i32 = arith.constant 0 : i32
    %c8_i32 = arith.constant 8 : i32
    %1 = arith.muli %c0_i32, %c8_i32 : i32
    %2 = tpu.assume_multiple %1, 8 : i32
    %c0_0 = arith.constant 0 : index
    %3 = arith.index_cast %2 : i32 to index
    %c0_1 = arith.constant 0 : index
    %4 = vector.load %arg2[%c0_0, %3, %c0_1] : memref<9x8x512xf32, #tpu.memory_space<vmem>>, vector<1x8x512xf32>
    %5 = vector.shape_cast %4 : vector<1x8x512xf32> to vector<8x512xf32>
    %c1 = arith.constant 1 : index
    %6 = arith.index_cast %2 : i32 to index
    %c0_2 = arith.constant 0 : index
    %7 = vector.load %arg2[%c1, %6, %c0_2] : memref<9x8x512xf32, #tpu.memory_space<vmem>>, vector<1x8x512xf32>
    %8 = vector.shape_cast %7 : vector<1x8x512xf32> to vector<8x512xf32>
    %c2 = arith.constant 2 : index
    %9 = arith.index_cast %2 : i32 to index
    %c0_3 = arith.constant 0 : index
    %10 = vector.load %arg2[%c2, %9, %c0_3] : memref<9x8x512xf32, #tpu.memory_space<vmem>>, vector<1x8x512xf32>
    %11 = vector.shape_cast %10 : vector<1x8x512xf32> to vector<8x512xf32>
    %c3 = arith.constant 3 : index
    %12 = arith.index_cast %2 : i32 to index
    %c0_4 = arith.constant 0 : index
    %13 = vector.load %arg2[%c3, %12, %c0_4] : memref<9x8x512xf32, #tpu.memory_space<vmem>>, vector<1x8x512xf32>
    %14 = vector.shape_cast %13 : vector<1x8x512xf32> to vector<8x512xf32>
    %c4 = arith.constant 4 : index
    %15 = arith.index_cast %2 : i32 to index
    %c0_5 = arith.constant 0 : index
    %16 = vector.load %arg2[%c4, %15, %c0_5] : memref<9x8x512xf32, #tpu.memory_space<vmem>>, vector<1x8x512xf32>
    %17 = vector.shape_cast %16 : vector<1x8x512xf32> to vector<8x512xf32>
    %c5 = arith.constant 5 : index
    %18 = arith.index_cast %2 : i32 to index
    %c0_6 = arith.constant 0 : index
    %19 = vector.load %arg2[%c5, %18, %c0_6] : memref<9x8x512xf32, #tpu.memory_space<vmem>>, vector<1x8x512xf32>
    %20 = vector.shape_cast %19 : vector<1x8x512xf32> to vector<8x512xf32>
    %c6 = arith.constant 6 : index
    %21 = arith.index_cast %2 : i32 to index
    %c0_7 = arith.constant 0 : index
    %22 = vector.load %arg2[%c6, %21, %c0_7] : memref<9x8x512xf32, #tpu.memory_space<vmem>>, vector<1x8x512xf32>
    %23 = vector.shape_cast %22 : vector<1x8x512xf32> to vector<8x512xf32>
    %c7 = arith.constant 7 : index
    %24 = arith.index_cast %2 : i32 to index
    %c0_8 = arith.constant 0 : index
    %25 = vector.load %arg2[%c7, %24, %c0_8] : memref<9x8x512xf32, #tpu.memory_space<vmem>>, vector<1x8x512xf32>
    %26 = vector.shape_cast %25 : vector<1x8x512xf32> to vector<8x512xf32>
    %c8 = arith.constant 8 : index
    %27 = arith.index_cast %2 : i32 to index
    %c0_9 = arith.constant 0 : index
    %28 = vector.load %arg2[%c8, %27, %c0_9] : memref<9x8x512xf32, #tpu.memory_space<vmem>>, vector<1x8x512xf32>
    %29 = vector.shape_cast %28 : vector<1x8x512xf32> to vector<8x512xf32>
    %30 = arith.mulf %17, %29 : vector<8x512xf32>
    %31 = arith.mulf %20, %26 : vector<8x512xf32>
    %32 = arith.subf %30, %31 : vector<8x512xf32>
    %33 = arith.mulf %5, %32 : vector<8x512xf32>
    %34 = arith.mulf %14, %29 : vector<8x512xf32>
    %35 = arith.mulf %20, %23 : vector<8x512xf32>
    %36 = arith.subf %34, %35 : vector<8x512xf32>
    %37 = arith.mulf %8, %36 : vector<8x512xf32>
    %38 = arith.subf %33, %37 : vector<8x512xf32>
    %39 = arith.mulf %14, %26 : vector<8x512xf32>
    %40 = arith.mulf %17, %23 : vector<8x512xf32>
    %41 = arith.subf %39, %40 : vector<8x512xf32>
    %42 = arith.mulf %11, %41 : vector<8x512xf32>
    %43 = arith.addf %38, %42 : vector<8x512xf32>
    %44 = vector.broadcast %0 : f32 to vector<8x512xf32>
    %45 = arith.mulf %44, %43 : vector<8x512xf32>
    %cst = arith.constant 1.000000e+00 : f32
    %46 = vector.broadcast %cst : f32 to vector<8x512xf32>
    %47 = arith.subf %43, %46 : vector<8x512xf32>
    %48 = arith.mulf %45, %47 : vector<8x512xf32>
    %49 = arith.index_cast %2 : i32 to index
    %c0_10 = arith.constant 0 : index
    %50 = vector.load %arg3[%49, %c0_10] : memref<8x512xf32, #tpu.memory_space<vmem>>, vector<8x512xf32>
    tpu.vector_store %arg3[%49, %c0_10], %48 {strides = array<i32>} : memref<8x512xf32, #tpu.memory_space<vmem>>, vector<8x512xf32>,
    %c1_i32 = arith.constant 1 : i32
    return
  }
  func.func @transform_0(%arg0: i32) -> i32 {
    %c0_i32 = arith.constant 0 : i32
    %c0_i32_0 = arith.constant 0 : i32
    return %c0_i32 : i32
  }
  func.func @transform_1(%arg0: i32) -> (i32, i32, i32) {
    %c0_i32 = arith.constant 0 : i32
    %c0_i32_0 = arith.constant 0 : i32
    %c0_i32_1 = arith.constant 0 : i32
    return %c0_i32, %arg0, %c0_i32_0 : i32, i32, i32
  }
  func.func @transform_2(%arg0: i32) -> (i32, i32) {
    %c0_i32 = arith.constant 0 : i32
    %c0_i32_0 = arith.constant 0 : i32
    return %arg0, %c0_i32 : i32, i32
  }
}

</mosaic_0001>

<bundles_post_ra>
// kernel: tpu_custom_call.1
= control target key start
LH: loop header
LB: loop body
LE: loop exit
PB: predicated region body
PF: predicated region fallthrough
CT: control target
= control target key end

     0   :  { %8 = vsyncpa [#allocation4], 0  ;;  %s275_s0 = inlined_call_operand.<no memory space> [shape: f32[1], index: 0, kind: input, shape index: {}]   ;;  %s276_s1 = inlined_call_operand.hbm [shape: f32[9,8,512], index: 1, kind: input, shape index: {}]   ;;  %s277_s2 = inlined_call_operand.hbm [shape: f32[8,512], index: 2, kind: output, shape index: {}]  }
   0x1   :  { %9 = vsyncpa [#allocation5], 0  ;;  %s241_s9 = smov [#allocation3]  }
   0x2   :  { %s17_s10 = sshll.u32 %s241_s9, 4  ;;  %s18_s10 = int_to_ptr.vmem [resolvable:$true] %s17_s10 }
   0x3   :  { %s205_s11 = scalar_lea.vmem %s18_s10, 4608  ;;  %p210_p1 = scmp.lt.s32.totalorder %s18_s10, %s18_s10 }
   0x4   :  { %p206_p0 = scmp.ne.s32.totalorder %s18_s10, %s205_s11  ;;  %p211_p2 = scmp.lt.s32.totalorder %s205_s11, %s205_s11 }
   0x6   :  { %p212_p3 = por %p211_p2, %p210_p1 }
   0x8   :  { %p213_p4 = pnand %p212_p3, %p206_p0 }
   0xa   :  { %216 = shalt.err (!%p213_p4)
}
   0xb   :  { %s242_s12 = smov 512   ;;  %s243_s13 = smov 32  }
   0xc   :  { %23 = dma.hbm_to_vmem [thread:$0]  %s276_s1, 4608, %s18_s10, [#allocation4], %s242_s12, %s242_s12, %s243_s13  }
   0xd   :  { %237 = dma.done.wait [#allocation4], 4608  }
   0xe   :  { %238 = vsyncadd [#allocation4], 4294962688  ;;  %v52_v0 = vld [vmem:[#allocation3 + $0x60] sm:$0xff]  ;;  %v53_v15 = vld [vmem:[#allocation3 + $0x68] sm:$0xff]  ;;  %v266_v37 = vstv %s275_s0  ;;  %s244_s0 = smov [#allocation6]  }
   0xf   :  { %v59_v1 = vld [vmem:[#allocation3 + $0x80] sm:$0xff]  ;;  %v60_v16 = vld [vmem:[#allocation3 + $0x88] sm:$0xff]  ;;  %v54_v33 = vld [vmem:[#allocation3 + $0x70] sm:$0xff]  ;;  %s172_s17 = sshll.u32 %s244_s0, 4  ;;  %s173_s17 = int_to_ptr.vmem [resolvable:$true] %s172_s17 }
  0x10   :  { %v66_v2 = vld [vmem:[#allocation3 + $0xa0] sm:$0xff]  ;;  %v67_v17 = vld [vmem:[#allocation3 + $0xa8] sm:$0xff]  ;;  %v61_v34 = vld [vmem:[#allocation3 + $0x90] sm:$0xff]  ;;  %s217_s18 = scalar_lea.vmem %s173_s17, 512  ;;  %p222_p6 = scmp.lt.s32.totalorder %s173_s17, %s173_s17 }
  0x11   :  { %v73_v3 = vld [vmem:[#allocation3 + $0xc0] sm:$0xff]  ;;  %v74_v20 = vld [vmem:[#allocation3 + $0xc8] sm:$0xff]  ;;  %v68_v35 = vld [vmem:[#allocation3 + $0xb0] sm:$0xff]  ;;  %p218_p5 = scmp.ne.s32.totalorder %s173_s17, %s217_s18  ;;  %p223_p7 = scmp.lt.s32.totalorder %s217_s18, %s217_s18 }
  0x12   :  { %v80_v4 = vld [vmem:[#allocation3 + $0xe0] sm:$0xff]  ;;  %v111_v12 = vmul.f32 %v73_v3, %v66_v2  ;;  %v131_v14 = vmul.f32 %v73_v3, %v59_v1  ;;  %v81_v21 = vld [vmem:[#allocation3 + $0xe8] sm:$0xff]  ;;  %v112_v31 = vmul.f32 %v74_v20, %v67_v17  ;;  %v132_v39 = vmul.f32 %v74_v20, %v60_v16  ;;  %v75_v40 = vld [vmem:[#allocation3 + $0xd0] sm:$0xff] }
  0x13   :  { %v87_v5 = vld [vmem:[#allocation3 + $0x100] sm:$0xff]  ;;  %v95_v10 = vmul.f32 %v80_v4, %v66_v2  ;;  %v127_v13 = vmul.f32 %v80_v4, %v52_v0  ;;  %v88_v22 = vld [vmem:[#allocation3 + $0x108] sm:$0xff]  ;;  %v96_v27 = vmul.f32 %v81_v21, %v67_v17  ;;  %v128_v32 = vmul.f32 %v81_v21, %v53_v15  ;;  %v82_v41 = vld [vmem:[#allocation3 + $0xf0] sm:$0xff]  ;;  %p224_p8 = por %p223_p7, %p222_p6 }
  0x14   :  { %v31_v6 = vld [vmem:[#allocation3] sm:$0xff]  ;;  %v91_v9 = vmul.f32 %v87_v5, %v59_v1  ;;  %v107_v11 = vmul.f32 %v87_v5, %v52_v0  ;;  %v32_v24 = vld [vmem:[#allocation3 + $0x8] sm:$0xff]  ;;  %v92_v26 = vmul.f32 %v88_v22, %v60_v16  ;;  %v108_v28 = vmul.f32 %v88_v22, %v53_v15  ;;  %v89_v42 = vld [vmem:[#allocation3 + $0x110] sm:$0xff] }
  0x15   :  { %v38_v7 = vld [vmem:[#allocation3 + $0x20] sm:$0xff]  ;;  %v135_v23 = vsub.f32 %v127_v13, %v131_v14  ;;  %v39_v25 = vld [vmem:[#allocation3 + $0x28] sm:$0xff]  ;;  %v33_v46 = vld [vmem:[#allocation3 + $0x10] sm:$0xff]  ;;  %v93_v47 = vmul.f32 %v89_v42, %v61_v34  ;;  %v97_v48 = vmul.f32 %v82_v41, %v68_v35  ;;  %v136_v50 = vsub.f32 %v128_v32, %v132_v39  ;;  %p225_p9 = pnand %p224_p8, %p218_p5 }
  0x16   :  { %v45_v8 = vld [vmem:[#allocation3 + $0x40] sm:$0xff]  ;;  %v99_v18 = vsub.f32 %v91_v9, %v95_v10  ;;  %v115_v19 = vsub.f32 %v107_v11, %v111_v12  ;;  %v100_v38 = vsub.f32 %v92_v26, %v96_v27  ;;  %v46_v44 = vld [vmem:[#allocation3 + $0x48] sm:$0xff]  ;;  %v116_v45 = vsub.f32 %v108_v28, %v112_v31  ;;  %v40_v51 = vld [vmem:[#allocation3 + $0x30] sm:$0xff] }
  0x17   :  { %v139_v36 = vmul.f32 %v135_v23, %v45_v8  ;;  %v109_v52 = vmul.f32 %v89_v42, %v54_v33  ;;  %v113_v53 = vmul.f32 %v75_v40, %v68_v35  ;;  %v55_v54 = vld [vmem:[#allocation3 + $0x78] sm:$0xff]  ;;  %v101_v58 = vsub.f32 %v93_v47, %v97_v48 }
  0x18   :  { %v103_v29 = vmul.f32 %v99_v18, %v31_v6  ;;  %v119_v30 = vmul.f32 %v115_v19, %v38_v7  ;;  %v104_v49 = vmul.f32 %v100_v38, %v32_v24  ;;  %v62_v55 = vld [vmem:[#allocation3 + $0x98] sm:$0xff]  ;;  %v120_v57 = vmul.f32 %v116_v45, %v39_v25  ;;  %v47_v7 = vld [vmem:[#allocation3 + $0x50] sm:$0xff] }
  0x19   :  { %v129_v59 = vmul.f32 %v82_v41, %v54_v33  ;;  %v69_v60 = vld [vmem:[#allocation3 + $0xb8] sm:$0xff]  ;;  %v140_v63 = vmul.f32 %v136_v50, %v46_v44  ;;  %v117_v0 = vsub.f32 %v109_v52, %v113_v53  ;;  %v133_v1 = vmul.f32 %v75_v40, %v61_v34 }
  0x1a   :  { %v123_v43 = vsub.f32 %v103_v29, %v119_v30  ;;  %v83_v61 = vld [vmem:[#allocation3 + $0xf8] sm:$0xff]  ;;  %v124_v6 = vsub.f32 %v104_v49, %v120_v57  ;;  %v105_v8 = vmul.f32 %v101_v58, %v33_v46 }
  0x1b   :  { %v90_v62 = vld [vmem:[#allocation3 + $0x118] sm:$0xff]  ;;  %v121_v9 = vmul.f32 %v117_v0, %v40_v51  ;;  %v137_v10 = vsub.f32 %v129_v59, %v133_v1  ;;  %v98_v11 = vmul.f32 %v83_v61, %v69_v60  ;;  %v130_v17 = vmul.f32 %v83_v61, %v55_v54 }
  0x1c   :  { %v143_v56 = vadd.f32 %v139_v36, %v123_v43  ;;  %v76_v2 = vld [vmem:[#allocation3 + $0xd8] sm:$0xff]  ;;  %v94_v3 = vmul.f32 %v90_v62, %v62_v55  ;;  %v110_v12 = vmul.f32 %v90_v62, %v55_v54  ;;  %v144_v14 = vadd.f32 %v140_v63, %v124_v6 }
  0x1d   :  { %v34_v15 = vld [vmem:[#allocation3 + $0x18] sm:$0xff]  ;;  %v114_v16 = vmul.f32 %v76_v2, %v69_v60  ;;  %v125_v18 = vsub.f32 %v105_v8, %v121_v9  ;;  %v141_v19 = vmul.f32 %v137_v10, %v47_v7  ;;  %v134_v22 = vmul.f32 %v76_v2, %v62_v55 }
  0x1e   :  { %v148_v4 = vmul.f32 %v266_v37, %v143_v56  ;;  %v189_v5 = vadd.f32 -1.0, %v143_v56  ;;  %v41_v20 = vld [vmem:[#allocation3 + $0x38] sm:$0xff]  ;;  %v102_v21 = vsub.f32 %v94_v3, %v98_v11  ;;  %v149_v23 = vmul.f32 %v266_v37, %v144_v14 }
  0x1f   :  { %v190_v24 = vadd.f32 -1.0, %v144_v14  ;;  %v48_v25 = vld [vmem:[#allocation3 + $0x58] sm:$0xff]  ;;  %v118_v26 = vsub.f32 %v110_v12, %v114_v16  ;;  %v145_v27 = vadd.f32 %v141_v19, %v125_v18  ;;  %v138_v29 = vsub.f32 %v130_v17, %v134_v22 }
  0x20   :  { %v156_v13 = vmul.f32 %v189_v5, %v148_v4  ;;  %v106_v28 = vmul.f32 %v102_v21, %v34_v15 }
  0x21   :  { %v157_v30 = vmul.f32 %v190_v24, %v149_v23  ;;  %v122_v31 = vmul.f32 %v118_v26, %v41_v20  ;;  %v150_v32 = vmul.f32 %v266_v37, %v145_v27  ;;  %v191_v33 = vadd.f32 -1.0, %v145_v27 }
  0x22   :  { %162 = vst [vmem:[#allocation6] sm:$0xff] %v156_v13  ;;  %v142_v34 = vmul.f32 %v138_v29, %v48_v25 }
  0x23   :  { %163 = vst [vmem:[#allocation6 + $0x8] sm:$0xff] %v157_v30  ;;  %v126_v35 = vsub.f32 %v106_v28, %v122_v31  ;;  %v158_v36 = vmul.f32 %v191_v33, %v150_v32 }
  0x25   :  { %v146_v38 = vadd.f32 %v142_v34, %v126_v35  ;;  %164 = vst [vmem:[#allocation6 + $0x10] sm:$0xff] %v158_v36 }
  0x27   :  { %v151_v39 = vmul.f32 %v266_v37, %v146_v38  ;;  %v192_v40 = vadd.f32 -1.0, %v146_v38 }
  0x29   :  { %v159_v41 = vmul.f32 %v192_v40, %v151_v39 }
  0x2b   :  { %165 = vst [vmem:[#allocation6 + $0x18] sm:$0xff] %v159_v41 }
  0x2c   :  { %228 = shalt.err (!%p225_p9)
}
  0x2d   :  { %175 = dma.vmem_to_hbm [thread:$0]  %s173_s17, 512, %s277_s2, [#allocation5]  }
  0x2e   :  { %239 = dma.done.wait [#allocation5], 512  }
  0x2f   :  { %240 = vsyncadd [#allocation5], 4294966784 }
  0x30   :  { %179 = vsyncpa [#allocation4], 1 }
  0x31   :  { %180 = vsyncpa [#allocation5], 1 }

</bundles_post_ra>
